<compile_context>
chip_gen: v7x
topology: tpu7x:2x2x1
jax: 0.10.0
libtpu: 0.0.40
codegen_flags: <defaults>
</compile_context>

<pallas_src>
import jax
import jax.numpy as jnp
from jax.experimental import pallas as pl
from jax.experimental.pallas import tpu as pltpu

HIDDEN = 256
SUBLANE = 16  # bf16 sublane packing width (also satisfies the f32 8-sublane rule)


def _round_up(x, m):
    return ((x + m - 1) // m) * m


def _actor_kernel(ma_ref, x_ref, w1_ref, b1_ref, w2_ref, b2_ref,
                  w3_ref, b3_ref, out_ref):
    """One batch tile: three MXU matmuls (bf16 in, f32 acc) + relu/relu/tanh."""
    max_action = ma_ref[0, 0]                                         # SMEM scalar
    x = x_ref[...].astype(jnp.bfloat16)                               # [TM, S]
    h1 = jnp.dot(x, w1_ref[...], preferred_element_type=jnp.float32)  # [TM, 256]
    h1 = jnp.maximum(h1 + b1_ref[...], 0.0)
    h2 = jnp.dot(h1.astype(jnp.bfloat16), w2_ref[...],
                 preferred_element_type=jnp.float32)                  # [TM, 256]
    h2 = jnp.maximum(h2 + b2_ref[...], 0.0)
    h3 = jnp.dot(h2.astype(jnp.bfloat16), w3_ref[...],
                 preferred_element_type=jnp.float32)                  # [TM, A]
    h3 = h3 + b3_ref[...]
    out_ref[...] = (max_action * jnp.tanh(h3)).astype(out_ref.dtype)


def prepare_actor_params(params):
    """One-time cast of the weights to MXU-ready bf16; biases stay f32.

    Call once after (re-)initializing / updating params, cache the result, and
    pass it to actor_forward -- this removes all per-call weight pad/cast work.
    """
    return {
        "w1": params["w1"].astype(jnp.bfloat16),   # [S, 256]
        "b1": params["b1"].astype(jnp.float32),    # [1, 256]
        "w2": params["w2"].astype(jnp.bfloat16),   # [256, 256]
        "b2": params["b2"].astype(jnp.float32),    # [1, 256]
        "w3": params["w3"].astype(jnp.bfloat16),   # [256, A]
        "b3": params["b3"].astype(jnp.float32),    # [1, A]
    }


def actor_forward(state, prepared, max_action, *, tm=1024):
    """state: [B, state_dim] f32. prepared: output of prepare_actor_params."""
    B, S = state.shape
    A = prepared["w3"].shape[1]

    # Batch tile: multiple of 16 sublanes. For B >= 32 cap at ~B/2 so there are
    # at least 2 grid steps (both v7x TensorCores busy); otherwise one tile.
    if B >= 2 * SUBLANE:
        TM = min(tm, _round_up(-(-B // 2), SUBLANE))
    else:
        TM = _round_up(max(B, 1), SUBLANE)
    grid = (pl.cdiv(B, TM),)

    # max_action as an SMEM scalar: works with traced values, no recompiles.
    ma = jnp.full((1, 1), max_action, dtype=jnp.float32)

    const = lambda shape: pl.BlockSpec(shape, lambda i: (0, 0))  # VMEM-resident

    out = pl.pallas_call(
        _actor_kernel,
        out_shape=jax.ShapeDtypeStruct((B, A), jnp.float32),
        grid=grid,
        in_specs=[
            pl.BlockSpec(memory_space=pltpu.MemorySpace.SMEM),   # max_action
            pl.BlockSpec((TM, S), lambda i: (i, 0)),             # state (tiled)
            const((S, HIDDEN)),                                  # w1 (resident)
            const((1, HIDDEN)),                                  # b1
            const((HIDDEN, HIDDEN)),                             # w2
            const((1, HIDDEN)),                                  # b2
            const((HIDDEN, A)),                                  # w3
            const((1, A)),                                       # b3
        ],
        out_specs=pl.BlockSpec((TM, A), lambda i: (i, 0)),
        compiler_params=pltpu.CompilerParams(
            dimension_semantics=("parallel",)),                  # megacore on v7x
    )(ma, state, prepared["w1"], prepared["b1"], prepared["w2"],
      prepared["b2"], prepared["w3"], prepared["b3"])

    return out


def init_actor_params(key, state_dim, action_dim):
    """nn.Linear-style U(-1/sqrt(fan_in), +1/sqrt(fan_in)) init.

    Weights are stored transposed to [in, out]; biases as [1, out].
    """
    keys = jax.random.split(key, 6)

    def linear(kw, kb, fan_in, fan_out):
        bound = 1.0 / jnp.sqrt(jnp.float32(fan_in))
        w = jax.random.uniform(kw, (fan_in, fan_out), jnp.float32, -bound, bound)
        b = jax.random.uniform(kb, (1, fan_out), jnp.float32, -bound, bound)
        return w, b

    w1, b1 = linear(keys[0], keys[1], state_dim, HIDDEN)
    w2, b2 = linear(keys[2], keys[3], HIDDEN, HIDDEN)
    w3, b3 = linear(keys[4], keys[5], HIDDEN, action_dim)
    return {"w1": w1, "b1": b1, "w2": w2, "b2": b2, "w3": w3, "b3": b3}


if __name__ == "__main__":
    key = jax.random.PRNGKey(0)
    k_params, k_state = jax.random.split(key)

    batch = 2
    state_dim = 16
    action_dim = 8
    max_action = 1.0

    params = init_actor_params(k_params, state_dim, action_dim)
    prepared = prepare_actor_params(params)       # one-time weight cast
    state = jax.random.normal(k_state, (batch, state_dim), jnp.float32)

    out = actor_forward(state, prepared, max_action)
    out = jax.block_until_ready(out)

    # Reference in plain JAX with the same bf16-operand / f32-accumulate math
    # (the bf16 operands are intentional; tolerance reflects that).
    xb = state.astype(jnp.bfloat16)
    h1 = jnp.maximum(
        jnp.dot(xb, prepared["w1"], preferred_element_type=jnp.float32)
        + params["b1"], 0.0)
    h2 = jnp.maximum(
        jnp.dot(h1.astype(jnp.bfloat16), prepared["w2"],
                preferred_element_type=jnp.float32) + params["b2"], 0.0)
    ref = max_action * jnp.tanh(
        jnp.dot(h2.astype(jnp.bfloat16), prepared["w3"],
                preferred_element_type=jnp.float32) + params["b3"])

    assert out.shape == (batch, action_dim)
    assert jnp.allclose(out, ref, atol=1e-2, rtol=1e-2)

    print("KERNEL_OK")
</pallas_src>

<mosaic_0001>
module attributes {stable_mosaic.version = 11 : i64} {
  func.func @_actor_kernel(%arg0: i32, %arg1: memref<1x1xf32, #tpu.memory_space<smem>>, %arg2: memref<16x16xf32, #tpu.memory_space<vmem>>, %arg3: memref<16x256xbf16, #tpu.memory_space<vmem>>, %arg4: memref<1x256xf32, #tpu.memory_space<vmem>>, %arg5: memref<256x256xbf16, #tpu.memory_space<vmem>>, %arg6: memref<1x256xf32, #tpu.memory_space<vmem>>, %arg7: memref<256x8xbf16, #tpu.memory_space<vmem>>, %arg8: memref<1x8xf32, #tpu.memory_space<vmem>>, %arg9: memref<16x8xf32, #tpu.memory_space<vmem>>) attributes {dimension_semantics = [#tpu.dimension_semantics<parallel>], iteration_bounds = array<i64: 1>, scalar_prefetch = 0 : i64, scratch_operands = 0 : i64, tpu.core_type = #tpu.core_type<tc>, window_params = [{transform_indices = @transform_0, window_bounds = array<i64: 1, 1>}, {transform_indices = @transform_1, window_bounds = array<i64: 16, 16>}, {pipeline_mode = #tpu.pipeline_mode<synchronous>, transform_indices = @transform_2, window_bounds = array<i64: 16, 256>}, {pipeline_mode = #tpu.pipeline_mode<synchronous>, transform_indices = @transform_3, window_bounds = array<i64: 1, 256>}, {pipeline_mode = #tpu.pipeline_mode<synchronous>, transform_indices = @transform_4, window_bounds = array<i64: 256, 256>}, {pipeline_mode = #tpu.pipeline_mode<synchronous>, transform_indices = @transform_5, window_bounds = array<i64: 1, 256>}, {pipeline_mode = #tpu.pipeline_mode<synchronous>, transform_indices = @transform_6, window_bounds = array<i64: 256, 8>}, {pipeline_mode = #tpu.pipeline_mode<synchronous>, transform_indices = @transform_7, window_bounds = array<i64: 1, 8>}, {transform_indices = @transform_8, window_bounds = array<i64: 16, 8>}]} {
    %c0 = arith.constant 0 : index
    %c0_0 = arith.constant 0 : index
    %0 = memref.load %arg1[%c0, %c0_0] : memref<1x1xf32, #tpu.memory_space<smem>>
    %c0_1 = arith.constant 0 : index
    %c0_2 = arith.constant 0 : index
    %1 = vector.load %arg2[%c0_1, %c0_2] : memref<16x16xf32, #tpu.memory_space<vmem>>, vector<16x16xf32>
    %2 = arith.truncf %1 : vector<16x16xf32> to vector<16x16xbf16>
    %c0_3 = arith.constant 0 : index
    %c0_4 = arith.constant 0 : index
    %3 = vector.load %arg3[%c0_3, %c0_4] : memref<16x256xbf16, #tpu.memory_space<vmem>>, vector<16x256xbf16>
    %cst = arith.constant dense<0.000000e+00> : vector<16x256xf32>
    %4 = tpu.matmul %2, %3, %cst {dimension_numbers = #tpu.dot_dimension_numbers<[1], [0], [0], [1], [0, 0, 1, 1], [], []>} : vector<16x16xbf16>, vector<16x256xbf16>, vector<16x256xf32> -> vector<16x256xf32>
    %c0_5 = arith.constant 0 : index
    %c0_6 = arith.constant 0 : index
    %5 = vector.load %arg4[%c0_5, %c0_6] : memref<1x256xf32, #tpu.memory_space<vmem>>, vector<1x256xf32>
    %6 = vector.broadcast %5 : vector<1x256xf32> to vector<16x256xf32>
    %7 = arith.addf %4, %6 : vector<16x256xf32>
    %cst_7 = arith.constant 0.000000e+00 : f32
    %8 = vector.broadcast %cst_7 : f32 to vector<16x256xf32>
    %9 = arith.maximumf %7, %8 : vector<16x256xf32>
    %10 = arith.truncf %9 : vector<16x256xf32> to vector<16x256xbf16>
    %c0_8 = arith.constant 0 : index
    %c0_9 = arith.constant 0 : index
    %11 = vector.load %arg5[%c0_8, %c0_9] : memref<256x256xbf16, #tpu.memory_space<vmem>>, vector<256x256xbf16>
    %cst_10 = arith.constant dense<0.000000e+00> : vector<16x256xf32>
    %12 = tpu.matmul %10, %11, %cst_10 {dimension_numbers = #tpu.dot_dimension_numbers<[1], [0], [0], [1], [0, 0, 1, 1], [], []>} : vector<16x256xbf16>, vector<256x256xbf16>, vector<16x256xf32> -> vector<16x256xf32>
    %c0_11 = arith.constant 0 : index
    %c0_12 = arith.constant 0 : index
    %13 = vector.load %arg6[%c0_11, %c0_12] : memref<1x256xf32, #tpu.memory_space<vmem>>, vector<1x256xf32>
    %14 = vector.broadcast %13 : vector<1x256xf32> to vector<16x256xf32>
    %15 = arith.addf %12, %14 : vector<16x256xf32>
    %cst_13 = arith.constant 0.000000e+00 : f32
    %16 = vector.broadcast %cst_13 : f32 to vector<16x256xf32>
    %17 = arith.maximumf %15, %16 : vector<16x256xf32>
    %18 = arith.truncf %17 : vector<16x256xf32> to vector<16x256xbf16>
    %c0_14 = arith.constant 0 : index
    %c0_15 = arith.constant 0 : index
    %19 = vector.load %arg7[%c0_14, %c0_15] : memref<256x8xbf16, #tpu.memory_space<vmem>>, vector<256x8xbf16>
    %cst_16 = arith.constant dense<0.000000e+00> : vector<16x8xf32>
    %20 = tpu.matmul %18, %19, %cst_16 {dimension_numbers = #tpu.dot_dimension_numbers<[1], [0], [0], [1], [0, 0, 1, 1], [], []>} : vector<16x256xbf16>, vector<256x8xbf16>, vector<16x8xf32> -> vector<16x8xf32>
    %c0_17 = arith.constant 0 : index
    %c0_18 = arith.constant 0 : index
    %21 = vector.load %arg8[%c0_17, %c0_18] : memref<1x8xf32, #tpu.memory_space<vmem>>, vector<1x8xf32>
    %22 = vector.broadcast %21 : vector<1x8xf32> to vector<16x8xf32>
    %23 = arith.addf %20, %22 : vector<16x8xf32>
    %24 = math.tanh %23 : vector<16x8xf32>
    %25 = vector.broadcast %0 : f32 to vector<16x8xf32>
    %26 = arith.mulf %25, %24 : vector<16x8xf32>
    %c0_19 = arith.constant 0 : index
    %c0_20 = arith.constant 0 : index
    %27 = vector.load %arg9[%c0_19, %c0_20] : memref<16x8xf32, #tpu.memory_space<vmem>>, vector<16x8xf32>
    tpu.vector_store %arg9[%c0_19, %c0_20], %26 {strides = array<i32>} : memref<16x8xf32, #tpu.memory_space<vmem>>, vector<16x8xf32>,
    return
  }
  func.func @transform_0(%arg0: i32) -> (i32, i32) {
    %c0_i32 = arith.constant 0 : i32
    %c0_i32_0 = arith.constant 0 : i32
    %c0_i32_1 = arith.constant 0 : i32
    return %c0_i32, %c0_i32_0 : i32, i32
  }
  func.func @transform_1(%arg0: i32) -> (i32, i32) {
    %c0_i32 = arith.constant 0 : i32
    %c0_i32_0 = arith.constant 0 : i32
    return %arg0, %c0_i32 : i32, i32
  }
  func.func @transform_2(%arg0: i32) -> (i32, i32) {
    %c0_i32 = arith.constant 0 : i32
    %c0_i32_0 = arith.constant 0 : i32
    %c0_i32_1 = arith.constant 0 : i32
    return %c0_i32, %c0_i32_0 : i32, i32
  }
  func.func @transform_3(%arg0: i32) -> (i32, i32) {
    %c0_i32 = arith.constant 0 : i32
    %c0_i32_0 = arith.constant 0 : i32
    %c0_i32_1 = arith.constant 0 : i32
    return %c0_i32, %c0_i32_0 : i32, i32
  }
  func.func @transform_4(%arg0: i32) -> (i32, i32) {
    %c0_i32 = arith.constant 0 : i32
    %c0_i32_0 = arith.constant 0 : i32
    %c0_i32_1 = arith.constant 0 : i32
    return %c0_i32, %c0_i32_0 : i32, i32
  }
  func.func @transform_5(%arg0: i32) -> (i32, i32) {
    %c0_i32 = arith.constant 0 : i32
    %c0_i32_0 = arith.constant 0 : i32
    %c0_i32_1 = arith.constant 0 : i32
    return %c0_i32, %c0_i32_0 : i32, i32
  }
  func.func @transform_6(%arg0: i32) -> (i32, i32) {
    %c0_i32 = arith.constant 0 : i32
    %c0_i32_0 = arith.constant 0 : i32
    %c0_i32_1 = arith.constant 0 : i32
    return %c0_i32, %c0_i32_0 : i32, i32
  }
  func.func @transform_7(%arg0: i32) -> (i32, i32) {
    %c0_i32 = arith.constant 0 : i32
    %c0_i32_0 = arith.constant 0 : i32
    %c0_i32_1 = arith.constant 0 : i32
    return %c0_i32, %c0_i32_0 : i32, i32
  }
  func.func @transform_8(%arg0: i32) -> (i32, i32) {
    %c0_i32 = arith.constant 0 : i32
    %c0_i32_0 = arith.constant 0 : i32
    return %arg0, %c0_i32 : i32, i32
  }
}

</mosaic_0001>

<bundles_post_ra>
// kernel: tpu_custom_call.1
= control target key start
LH: loop header
LB: loop body
LE: loop exit
PB: predicated region body
PF: predicated region fallthrough
CT: control target
= control target key end

     0   :  { %14 = vsyncpa [#allocation4], 0  ;;  %s929_s0 = inlined_call_operand.<no memory space> [shape: f32[1,1], index: 0, kind: input, shape index: {}]   ;;  %s930_s1 = inlined_call_operand.vmem [shape: f32[2,16], index: 1, kind: input, shape index: {}]   ;;  %s931_s2 = inlined_call_operand.vmem [shape: bf16[16,256], index: 2, kind: input, shape index: {}]   ;;  %s932_s3 = inlined_call_operand.vmem [shape: f32[1,256], index: 3, kind: input, shape index: {}]   ;;  %s933_s4 = inlined_call_operand.hbm [shape: bf16[256,256], index: 4, kind: input, shape index: {}]   ;;  %s934_s5 = inlined_call_operand.vmem [shape: f32[1,256], index: 5, kind: input, shape index: {}]   ;;  %s935_s6 = inlined_call_operand.vmem [shape: bf16[256,8], index: 6, kind: input, shape index: {}]   ;;  %s936_s7 = inlined_call_operand.vmem [shape: f32[1,8], index: 7, kind: input, shape index: {}]   ;;  %s937_s8 = inlined_call_operand.hbm [shape: f32[2,8], index: 8, kind: output, shape index: {}]  }
   0x1   :  { %15 = vsyncpa [#allocation5], 0  ;;  %s781_s27 = smov [#allocation3]   ;;  %s733_s9 = scalar_lea.hbm %s933_s4, 4096 }
   0x2   :  { %s29_s28 = sshll.u32 %s781_s27, 4  ;;  %p734_p0 = scmp.ne.s32.totalorder %s933_s4, %s733_s9  ;;  %s30_s28 = int_to_ptr.vmem [resolvable:$true] %s29_s28 }
   0x3   :  { %p737_p1 = scmp.lt.u32.totalorder %s733_s9, %s933_s4 }
   0x5   :  { %p739_p2 = pnand %p737_p1, %p734_p0 }
   0x7   :  { %742 = shalt.err (!%p739_p2)
}
   0x8   :  { %s743_s14 = scalar_lea.vmem %s30_s28, 4096  ;;  %p748_p4 = scmp.lt.s32.totalorder %s30_s28, %s30_s28 }
   0x9   :  { %p744_p3 = scmp.ne.s32.totalorder %s30_s28, %s743_s14  ;;  %p749_p5 = scmp.lt.s32.totalorder %s743_s14, %s743_s14 }
   0xb   :  { %p750_p6 = por %p749_p5, %p748_p4 }
   0xd   :  { %p751_p7 = pnand %p750_p6, %p744_p3 }
   0xf   :  { %754 = shalt.err (!%p751_p7)
}
  0x10   :  { %s782_s15 = smov 128   ;;  %s783_s16 = smov 8  }
  0x11   :  { %35 = dma.hbm_to_vmem [thread:$0]  %s933_s4, 4096, %s30_s28, [#allocation4], %s782_s15, %s782_s15, %s783_s16  }
  0x12   :  { %777 = dma.done.wait [#allocation4], 4096  }
  0x13   :  { %778 = vsyncadd [#allocation4], 4294963200  ;;  %v784_v0 = vmov 0   ;;  %v662_v1 = vld [vmem:[%s931_s2 + $0x4] ss:$8 sps:$4 sm:$0xff]   ;;  %vm74_vm0 = vcmask 130048   ;;  %v54_v49 = vlaneseq }
  0x14   :  { %110 = vmatprep.mubr.bf16.mxu0 %v784_v0  ;;  %v664_v2 = vld [vmem:[%s931_s2] ss:$8 sps:$4 sm:$0xff]   ;;  %78 = vmatprep.subr.bf16.mxu0 %v662_v1  ;;  %v665_v6 = vld [vmem:[#allocation3 + $0x4] ss:$8 sps:$4 sm:$0xff]   ;;  %v668_v8 = vld [vmem:[#allocation3 + $0x14] ss:$8 sps:$4 sm:$0xff]  }
  0x15   :  { %v47_v3 = vld [vmem:[%s930_s1] sm:$0xff]  ;;  %v48_v4 = vld [vmem:[%s930_s1 + $0x8] sm:$0xff]  ;;  %79 = vmatpush1.bf16.msra.mxu0 %v664_v2  ;;  %331 = vmatprep.subr.bf16.mxu1 %v665_v6  ;;  %v670_v9 = vld [vmem:[#allocation3 + $0x10] ss:$8 sps:$4 sm:$0xff]   ;;  %v55_v50 = vshrl.u32 %v54_v49, 7  ;;  %vm561_vm1 = vcmask 64512  }
  0x16   :  { %v49_v5 = vpack.c.bf16 %v48_v4, %v47_v3  ;;  %v667_v7 = vld [vmem:[#allocation3] ss:$8 sps:$4 sm:$0xff]   ;;  %v671_v10 = vld [vmem:[#allocation3 + $0x24] ss:$8 sps:$4 sm:$0xff]   ;;  %v674_v12 = vld [vmem:[#allocation3 + $0x34] ss:$8 sps:$4 sm:$0xff]  }
  0x17   :  { %332 = vmatpush1.bf16.msra.mxu1 %v667_v7  ;;  %v673_v11 = vld [vmem:[#allocation3 + $0x20] ss:$8 sps:$4 sm:$0xff]   ;;  %v676_v13 = vld [vmem:[#allocation3 + $0x30] ss:$8 sps:$4 sm:$0xff]   ;;  %v677_v14 = vld [vmem:[#allocation3 + $0x44] ss:$8 sps:$4 sm:$0xff]  }
  0x18   :  { %583 = vmatmul.mubr.msk.bf16.vlgmr.msra.gmra.mrb[0].mxu0 %vm74_vm0, %v49_v5  ;;  %333 = vmatprep.subr.bf16.mxu1 %v668_v8  ;;  %v679_v15 = vld [vmem:[#allocation3 + $0x40] ss:$8 sps:$4 sm:$0xff]   ;;  %v680_v16 = vld [vmem:[#allocation3 + $0x54] ss:$8 sps:$4 sm:$0xff]   ;;  %v682_v17 = vld [vmem:[#allocation3 + $0x50] ss:$8 sps:$4 sm:$0xff]  }
  0x19   :  { %v683_v18 = vld [vmem:[#allocation3 + $0x64] ss:$8 sps:$4 sm:$0xff]   ;;  %v685_v19 = vld [vmem:[#allocation3 + $0x60] ss:$8 sps:$4 sm:$0xff]   ;;  %v686_v20 = vld [vmem:[#allocation3 + $0x74] ss:$8 sps:$4 sm:$0xff]  }
  0x1a   :  { %v688_v21 = vld [vmem:[#allocation3 + $0x70] ss:$8 sps:$4 sm:$0xff]   ;;  %v689_v22 = vld [vmem:[#allocation3 + $0x84] ss:$8 sps:$4 sm:$0xff]   ;;  %v691_v23 = vld [vmem:[#allocation3 + $0x80] ss:$8 sps:$4 sm:$0xff]  }
  0x1b   :  { %334 = vmatpush1.bf16.msra.mxu1 %v670_v9  ;;  %v692_v24 = vld [vmem:[#allocation3 + $0x94] ss:$8 sps:$4 sm:$0xff]   ;;  %v694_v25 = vld [vmem:[#allocation3 + $0x90] ss:$8 sps:$4 sm:$0xff]   ;;  %v695_v26 = vld [vmem:[#allocation3 + $0xa4] ss:$8 sps:$4 sm:$0xff]  }
  0x1c   :  { %335 = vmatprep.subr.bf16.mxu1 %v671_v10  ;;  %v697_v27 = vld [vmem:[#allocation3 + $0xa0] ss:$8 sps:$4 sm:$0xff]   ;;  %v698_v28 = vld [vmem:[#allocation3 + $0xb4] ss:$8 sps:$4 sm:$0xff]   ;;  %v700_v29 = vld [vmem:[#allocation3 + $0xb0] ss:$8 sps:$4 sm:$0xff]  }
  0x1d   :  { %v701_v30 = vld [vmem:[#allocation3 + $0xc4] ss:$8 sps:$4 sm:$0xff]   ;;  %v703_v31 = vld [vmem:[#allocation3 + $0xc0] ss:$8 sps:$4 sm:$0xff]   ;;  %v704_v32 = vld [vmem:[#allocation3 + $0xd4] ss:$8 sps:$4 sm:$0xff]  }
  0x1e   :  { %v706_v33 = vld [vmem:[#allocation3 + $0xd0] ss:$8 sps:$4 sm:$0xff]   ;;  %v707_v34 = vld [vmem:[#allocation3 + $0xe4] ss:$8 sps:$4 sm:$0xff]   ;;  %v709_v35 = vld [vmem:[#allocation3 + $0xe0] ss:$8 sps:$4 sm:$0xff]  }
  0x1f   :  { %336 = vmatpush1.bf16.msra.mxu1 %v673_v11  ;;  %v710_v36 = vld [vmem:[#allocation3 + $0xf4] ss:$8 sps:$4 sm:$0xff]   ;;  %v712_v37 = vld [vmem:[#allocation3 + $0xf0] ss:$8 sps:$4 sm:$0xff]   ;;  %v713_v38 = vld [vmem:[%s935_s6 + $0x40] sm:$0xff]   ;;  %v56_v51 = vsub.s32 0, %v55_v50 }
  0x20   :  { %337 = vmatprep.subr.bf16.mxu1 %v674_v12  ;;  %v714_v39 = vld [vmem:[%s935_s6] sm:$0xff]   ;;  %v715_v40 = vld [vmem:[%s935_s6 + $0x48] sm:$0xff]   ;;  %633 = vmatprep.subr.bf16.mxu0 %v713_v38  ;;  %v717_v42 = vld [vmem:[%s935_s6 + $0x50] sm:$0xff]   ;;  %v60_v53 = vsub.s32 1, %v55_v50 }
  0x21   :  { %634 = vmatpush3.bf16.msra.mxu0 %v714_v39  ;;  %v716_v41 = vld [vmem:[%s935_s6 + $0x8] sm:$0xff]   ;;  %v718_v43 = vld [vmem:[%s935_s6 + $0x10] sm:$0xff]   ;;  %v719_v44 = vld [vmem:[%s935_s6 + $0x58] sm:$0xff]  }
  0x22   :  { %635 = vmatprep.subr.bf16.mxu0 %v715_v40  ;;  %v720_v45 = vld [vmem:[%s935_s6 + $0x18] sm:$0xff]   ;;  %v721_v46 = vld [vmem:[%s935_s6 + $0x60] sm:$0xff]   ;;  %v723_v48 = vld [vmem:[%s935_s6 + $0x68] sm:$0xff]  }
  0x23   :  { %338 = vmatpush1.bf16.msra.mxu1 %v676_v13  ;;  %v722_v47 = vld [vmem:[%s935_s6 + $0x20] sm:$0xff]   ;;  %v724_v6 = vld [vmem:[%s935_s6 + $0x28] sm:$0xff]   ;;  %v725_v7 = vld [vmem:[%s935_s6 + $0x70] sm:$0xff]  }
  0x24   :  { %339 = vmatprep.subr.bf16.mxu1 %v677_v14  ;;  %v52_v52 = vld [vmem:[%s932_s3] sm:$0x3]  ;;  %v726_v8 = vld [vmem:[%s935_s6 + $0x30] sm:$0xff]   ;;  %v727_v9 = vld [vmem:[%s935_s6 + $0x78] sm:$0xff]  }
  0x25   :  { %636 = vmatpush3.bf16.msra.mxu0 %v716_v41  ;;  %v57_v54 = vrot.slane %v52_v52, %v56_v51  ;;  %v61_v55 = vrot.slane %v52_v52, %v60_v53  ;;  %v728_v10 = vld [vmem:[%s935_s6 + $0x38] sm:$0xff]   ;;  %v159_v11 = vld [vmem:[%s934_s5] sm:$0x3] }
  0x26   :  { %637 = vmatprep.subr.bf16.mxu0 %v717_v42  ;;  %v164_v12 = vrot.slane %v159_v11, %v56_v51  ;;  %v168_v13 = vrot.slane %v159_v11, %v60_v53 }
  0x27   :  { %340 = vmatpush1.bf16.msra.mxu1 %v679_v15 }
  0x28   :  { %341 = vmatprep.subr.bf16.mxu1 %v680_v16 }
  0x29   :  { %638 = vmatpush3.bf16.msra.mxu0 %v718_v43 }
  0x2a   :  { %639 = vmatprep.subr.bf16.mxu0 %v719_v44 }
  0x2b   :  { %342 = vmatpush1.bf16.msra.mxu1 %v682_v17 }
  0x2c   :  { %343 = vmatprep.subr.bf16.mxu1 %v683_v18 }
  0x2d   :  { %640 = vmatpush3.bf16.msra.mxu0 %v720_v45 }
  0x2e   :  { %641 = vmatprep.subr.bf16.mxu0 %v721_v46 }
  0x2f   :  { %344 = vmatpush1.bf16.msra.mxu1 %v685_v19 }
  0x30   :  { %345 = vmatprep.subr.bf16.mxu1 %v686_v20 }
  0x31   :  { %642 = vmatpush3.bf16.msra.mxu0 %v722_v47 }
  0x32   :  { %643 = vmatprep.subr.bf16.mxu0 %v723_v48 }
  0x33   :  { %346 = vmatpush1.bf16.msra.mxu1 %v688_v21 }
  0x34   :  { %347 = vmatprep.subr.bf16.mxu1 %v689_v22 }
  0x35   :  { %644 = vmatpush3.bf16.msra.mxu0 %v724_v6 }
  0x36   :  { %645 = vmatprep.subr.bf16.mxu0 %v725_v7 }
  0x37   :  { %348 = vmatpush1.bf16.msra.mxu1 %v691_v23 }
  0x38   :  { %349 = vmatprep.subr.bf16.mxu1 %v692_v24 }
  0x39   :  { %646 = vmatpush3.bf16.msra.mxu0 %v726_v8 }
  0x3a   :  { %647 = vmatprep.subr.bf16.mxu0 %v727_v9 }
  0x3b   :  { %350 = vmatpush1.bf16.msra.mxu1 %v694_v25 }
  0x3c   :  { %351 = vmatprep.subr.bf16.mxu1 %v695_v26 }
  0x3d   :  { %648 = vmatpush3.bf16.msra.mxu0 %v728_v10 }
  0x3f   :  { %352 = vmatpush1.bf16.msra.mxu1 %v697_v27 }
  0x40   :  { %353 = vmatprep.subr.bf16.mxu1 %v698_v28 }
  0x43   :  { %354 = vmatpush1.bf16.msra.mxu1 %v700_v29  ;;  %v616_v29 = vld [vmem:[%s936_s7] ss:$0 sm:$0xff] }
  0x44   :  { %355 = vmatprep.subr.bf16.mxu1 %v701_v30 }
  0x47   :  { %356 = vmatpush1.bf16.msra.mxu1 %v703_v31 }
  0x48   :  { %357 = vmatprep.subr.bf16.mxu1 %v704_v32 }
  0x4b   :  { %358 = vmatpush1.bf16.msra.mxu1 %v706_v33 }
  0x4c   :  { %359 = vmatprep.subr.bf16.mxu1 %v707_v34 }
  0x4f   :  { %360 = vmatpush1.bf16.msra.mxu1 %v709_v35 }
  0x50   :  { %361 = vmatprep.subr.bf16.mxu1 %v710_v36 }
  0x53   :  { %362 = vmatpush1.bf16.msra.mxu1 %v712_v37  ;;  %v558_v37 = vstv %s929_s0 }
  0xeb   :  { %v112_v56 = vpop.f32.mrb[0].mxu0 }
  0xec   :  { %v113_v57 = vadd.f32 %v112_v56, %v57_v54  ;;  %v114_v58 = vpop.f32.mrb[1].mxu0 }
  0xed   :  { %v115_v59 = vadd.f32 %v114_v58, %v61_v55  ;;  %v116_v60 = vpop.f32.mrb[2].mxu0 }
  0xee   :  { %v117_v61 = vadd.f32 %v116_v60, %v57_v54  ;;  %v118_v62 = vpop.f32.mrb[3].mxu0  ;;  %v121_v0 = vmax.f32 %v113_v57, 0.0 }
  0xef   :  { %v119_v63 = vadd.f32 %v118_v62, %v61_v55  ;;  %v122_v2 = vmax.f32 %v115_v59, 0.0 }
  0xf0   :  { %v123_v1 = vmax.f32 %v117_v61, 0.0 }
  0xf1   :  { %v124_v3 = vmax.f32 %v119_v63, 0.0 }
  0xf2   :  { %v125_v4 = vpack.c.bf16 %v123_v1, %v121_v0 }
  0xf3   :  { %v126_v5 = vpack.c.bf16 %v124_v3, %v122_v2 }
  0xf5   :  { %363 = vmatprep.mubr.bf16.mxu1 %v126_v5 }
  0xf6   :  { %364 = vmatmul.mubr.bf16.vlgmr.msra.gmra.mrb[0].mxu1 %v125_v4 }
 0x1c9   :  { %v365_v14 = vpop.f32.mrb[0].mxu1 }
 0x1ca   :  { %v366_v15 = vadd.f32 %v365_v14, %v164_v12  ;;  %v367_v16 = vpop.f32.mrb[1].mxu1 }
 0x1cb   :  { %v368_v17 = vadd.f32 %v367_v16, %v168_v13  ;;  %v369_v18 = vpop.f32.mrb[2].mxu1 }
 0x1cc   :  { %v370_v19 = vadd.f32 %v369_v18, %v164_v12  ;;  %v371_v20 = vpop.f32.mrb[3].mxu1  ;;  %v374_v22 = vmax.f32 %v366_v15, 0.0 }
 0x1cd   :  { %v372_v21 = vadd.f32 %v371_v20, %v168_v13  ;;  %v375_v24 = vmax.f32 %v368_v17, 0.0 }
 0x1ce   :  { %v376_v23 = vmax.f32 %v370_v19, 0.0 }
 0x1cf   :  { %v377_v25 = vmax.f32 %v372_v21, 0.0 }
 0x1d0   :  { %v378_v26 = vpack.c.bf16 %v376_v23, %v374_v22 }
 0x1d1   :  { %v379_v27 = vpack.c.bf16 %v377_v25, %v375_v24 }
 0x1d3   :  { %547 = vmatprep.mubr.bf16.mxu0 %v379_v27 }
 0x1d4   :  { %548 = vmatmul.mubr.bf16.vlgmr.msra.gmra.mrb[4].mxu0 %v378_v26 }
 0x2a7   :  { %v649_v28 = vpop.f32.mrb[4].mxu0 }
 0x2a8   :  { %v650_v30 = vpop.f32.mrb[5].mxu0 }
 0x2a9   :  { %v651_v31 = vadd.f32 %v650_v30, %v649_v28  ;;  %v652_v32 = vpop.f32.mrb[6].mxu0 }
 0x2aa   :  { %v653_v33 = vpop.f32.mrb[7].mxu0 }
 0x2ab   :  { %v550_v34 = vadd.f32 %v651_v31, %v616_v29  ;;  %v654_v35 = vadd.f32 %v653_v33, %v652_v32 }
 0x2ad   :  { %729 = vtanh.f32 %v550_v34  ;;  %v553_v36 = vadd.f32 %v654_v35, %v616_v29 }
 0x2af   :  { %731 = vtanh.f32 %v553_v36 }
 0x2b7   :  { %v730_v38 = vpop.eup %729 }
 0x2b8   :  { %v559_v39 = vmul.f32 %v730_v38, %v558_v37 }
 0x2b9   :  { %v732_v40 = vpop.eup %731 }
 0x2ba   :  { %562 = vst.msk [vmem:[#allocation6] sm:$0xff] %vm561_vm1, %v559_v39  ;;  %v560_v41 = vmul.f32 %v732_v40, %v558_v37 }
 0x2bc   :  { %563 = vst.msk [vmem:[#allocation6 + $0x8] sm:$0xff] %vm561_vm1, %v560_v41 }
 0x2bd   :  { %568 = vsyncadd [#allocation5], 224  ;;  %s785_s7 = smov [#allocation6]  }
 0x2be   :  { %s569_s14 = sshll.u32 %s785_s7, 4  ;;  %s570_s14 = int_to_ptr.vmem [resolvable:$true] %s569_s14 }
 0x2bf   :  { %s755_s15 = scalar_lea.vmem %s570_s14, 32  ;;  %s759_s16 = scalar_lea.vmem %s570_s14, 256 }
 0x2c0   :  { %p756_p8 = scmp.ne.s32.totalorder %s570_s14, %s755_s15  ;;  %p760_p9 = scmp.lt.s32.totalorder %s570_s14, %s570_s14 }
 0x2c1   :  { %p761_p10 = scmp.lt.s32.totalorder %s759_s16, %s755_s15 }
 0x2c3   :  { %p762_p11 = por %p761_p10, %p760_p9 }
 0x2c5   :  { %p763_p12 = pnand %p762_p11, %p756_p8 }
 0x2c7   :  { %766 = shalt.err (!%p763_p12)
}
 0x2c8   :  { %s767_s18 = scalar_lea.hbm %s937_s8, 32 }
 0x2c9   :  { %p768_p13 = scmp.ne.s32.totalorder %s937_s8, %s767_s18  ;;  %p771_p0 = scmp.lt.u32.totalorder %s767_s18, %s937_s8 }
 0x2cb   :  { %p773_p1 = pnand %p771_p0, %p768_p13 }
 0x2cd   :  { %776 = shalt.err (!%p773_p1)
}
 0x2ce   :  { %s786_s23 = smov 32   ;;  %s787_s24 = smov 2  }
 0x2cf   :  { %575 = dma.vmem_to_hbm [thread:$0]  %s570_s14, 32, %s937_s8, [#allocation5], %s786_s23, %s786_s23, %s787_s24  }
 0x2d0   :  { %779 = dma.done.wait [#allocation5], 256  }
 0x2d1   :  { %780 = vsyncadd [#allocation5], 4294967040 }
 0x2d2   :  { %579 = vsyncpa [#allocation4], 1 }
 0x2d3   :  { %580 = vsyncpa [#allocation5], 1 }

</bundles_post_ra>
